<compile_context>
chip_gen: v6e
topology: v6e:2x2x1
jax: 0.10.0
libtpu: 0.0.40
codegen_flags: <defaults>
</compile_context>

<pallas_src>
import math

import jax
import jax.numpy as jnp
from jax.experimental import pallas as pl
from jax.experimental.pallas import tpu as pltpu


LANE = 128
SUB_OFF = 16        # left halo rows; multiple of bf16 (16) and f32 (8) sublane packing
RIGHT_HALO = 8      # right halo rows (>= conv pad)


def _round_up(x, m):
    return ((x + m - 1) // m) * m


# ------------------------------ fused kernel --------------------------------
def _fused_cls_head_kernel(x_ref, m_ref, *refs):
    """All convs of the head for ONE batch element of ONE FPN level.

    x_ref : (T, C0)          f32 features, channels-last
    m_ref : (1, T)           f32 {0,1} mask, lane-dense
    refs  : w0, b0, ..., w_{L-1}, b_{L-1}, o_ref, buf_a, buf_b
            w_l   : (K, CMAX, COUT_l)   bf16 channel-padded weights
            b_l   : (1, COUT_l)         f32 bias
            o_ref : (CPAD, T)           f32 logits, written directly in NCT layout
            buf_* : (ROWS, CMAX)        bf16 ping-pong activation buffers (with halo)
    """
    n_conv = (len(refs) - 3) // 2
    wb = refs[:2 * n_conv]
    o_ref = refs[2 * n_conv]
    bufs = (refs[2 * n_conv + 1], refs[2 * n_conv + 2])

    T, c0 = x_ref.shape
    cmax = bufs[0].shape[1]
    K = wb[0].shape[0]
    pad = (K - 1) // 2

    # Column mask, hoisted out of the layer loop ((1, T) lane-dense -> (T, 1)).
    mcol = jnp.transpose(m_ref[...])                               # (T, 1) f32

    # Zero ONLY the halo rows the shifted conv reads touch (no full-buffer memsets).
    for buf in bufs:
        buf[SUB_OFF - pad:SUB_OFF, :] = jnp.zeros((pad, cmax), buf.dtype)
        buf[SUB_OFF + T:SUB_OFF + T + pad, :] = jnp.zeros((pad, cmax), buf.dtype)

    # Stage the input (bf16, channel-padded) at the sublane-aligned interior of buf0.
    xb = x_ref[...].astype(jnp.bfloat16)
    if c0 < cmax:
        xb = jnp.concatenate([xb, jnp.zeros((T, cmax - c0), jnp.bfloat16)], axis=-1)
    bufs[0][SUB_OFF:SUB_OFF + T, :] = xb
    # TODO(synk): DMA the feature straight into buf0's interior (memory_space=pl.ANY +
    #   make_async_copy) to drop this VMEM->VMEM staging copy entirely.

    for l in range(n_conv):                                        # static layer unroll
        w_ref, b_ref = wb[2 * l], wb[2 * l + 1]
        src = bufs[l % 2]

        # Conv1d(k=K, pad=pad) as K accumulated MXU matmuls over shifted sublane slices
        # of the halo'd activation buffer (no im2col materialization).
        acc = None
        for k in range(K):
            lo = SUB_OFF + k - pad
            part = jnp.dot(src[lo:lo + T, :], w_ref[k],
                           preferred_element_type=jnp.float32)
            acc = part if acc is None else acc + part

        y = (acc + b_ref[...]) * mcol                              # f32 bias + mask

        if l < n_conv - 1:
            y = jnp.maximum(y, 0.0)                                # ReLU (norm=Identity)
            dst = bufs[(l + 1) % 2]
            dst[SUB_OFF:SUB_OFF + T, :] = y.astype(dst.dtype)      # aligned bf16 store
        else:
            # Emit NCT directly: (T, CPAD) -> (CPAD, T) on the XLU, lane-dense store.
            o_ref[...] = jnp.transpose(y).astype(o_ref.dtype)


def _fused_cls_head_level(x_btc, m_b1t, weights, biases):
    """Run the whole head for one FPN level in a single pallas_call.

    x_btc   : (B, T, C0) f32 features (channels-last)
    m_b1t   : (B, 1, T)  f32 {0,1} mask
    weights : list of (K, CMAX, COUT_l) bf16 (channel-padded; last one is the cls conv)
    biases  : list of (1, COUT_l) f32
    returns : (B, CPAD, T) f32 logits, already in NCT layout
    """
    B, T, c0 = x_btc.shape
    K = weights[0].shape[0]
    assert K % 2 == 1, "same-length conv requires odd kernel size"
    pad = (K - 1) // 2
    assert pad <= SUB_OFF and pad <= RIGHT_HALO
    cmax = weights[0].shape[1]
    cpad = weights[-1].shape[2]
    rows = SUB_OFF + T + RIGHT_HALO

    flat_inputs = [x_btc, m_b1t]
    in_specs = [
        pl.BlockSpec((None, T, c0), lambda b: (b, 0, 0)),
        pl.BlockSpec((None, 1, T), lambda b: (b, 0, 0)),
    ]
    for w, bias in zip(weights, biases):
        flat_inputs += [w, bias]
        in_specs += [
            pl.BlockSpec(tuple(w.shape), lambda b: (0, 0, 0)),
            pl.BlockSpec(tuple(bias.shape), lambda b: (0, 0)),
        ]

    return pl.pallas_call(
        _fused_cls_head_kernel,
        out_shape=jax.ShapeDtypeStruct((B, cpad, T), x_btc.dtype),
        grid_spec=pltpu.PrefetchScalarGridSpec(
            num_scalar_prefetch=0,
            grid=(B,),
            in_specs=in_specs,
            out_specs=pl.BlockSpec((None, cpad, T), lambda b: (b, 0, 0)),
            scratch_shapes=[
                pltpu.VMEM((rows, cmax), jnp.bfloat16),
                pltpu.VMEM((rows, cmax), jnp.bfloat16),
            ],
        ),
        compiler_params=pltpu.CompilerParams(
            dimension_semantics=("parallel",),
        ),
    )(*flat_inputs)


# ---------------- parameter init (matches the PyTorch module) ----------------
def _conv_weight(key, in_dim, out_dim, K):
    # PyTorch Conv1d default init range; weight layout (out, in, K) -> (K, in, out).
    bound = 1.0 / math.sqrt(in_dim * K)
    w_oik = jax.random.uniform(key, (out_dim, in_dim, K),
                               minval=-bound, maxval=bound, dtype=jnp.float32)
    return jnp.transpose(w_oik, (2, 1, 0))


def init_cls_head_params(key, input_dim, feat_dim, num_classes,
                         prior_prob=0.01, num_layers=3, kernel_size=3,
                         empty_cls=()):
    params = {"head": []}
    for idx in range(num_layers - 1):
        in_dim = input_dim if idx == 0 else feat_dim
        key, kw = jax.random.split(key)
        w = _conv_weight(kw, in_dim, feat_dim, kernel_size)
        b = jnp.zeros((feat_dim,), jnp.float32)   # MaskedConv1D zero-inits bias
        params["head"].append((w, b))
    key, kc = jax.random.split(key)
    params["cls_w"] = _conv_weight(kc, feat_dim, num_classes, kernel_size)
    cls_b = jnp.full((num_classes,),
                     -math.log((1.0 - prior_prob) / prior_prob), jnp.float32)
    if len(empty_cls) > 0:
        empty_val = -math.log((1.0 - 1e-06) / 1e-06)
        cls_b = cls_b.at[jnp.array(list(empty_cls))].set(empty_val)
    params["cls_b"] = cls_b
    return params


# ---------------- public forward (PyTorch-style NCT in / NCT out) ------------
def pt_transformer_cls_head_forward(params, fpn_feats_nct, fpn_masks_b1t):
    assert len(fpn_feats_nct) == len(fpn_masks_b1t)
    num_classes = int(params["cls_b"].shape[0])
    cpad = _round_up(max(num_classes, 1), LANE)

    dims = [int(params["cls_w"].shape[1])]
    if len(params["head"]) > 0:
        dims.append(int(params["head"][0][0].shape[1]))
        dims += [int(w.shape[2]) for (w, _) in params["head"]]
    cmax = _round_up(max(dims), LANE)

    def pad_w(w, cout_p):
        Kk, cin, cout = w.shape
        wp = jnp.zeros((Kk, cmax, cout_p), jnp.bfloat16)
        return wp.at[:, :cin, :cout].set(w.astype(jnp.bfloat16))

    def pad_b(b, cout_p):
        bp = jnp.zeros((cout_p,), jnp.float32)
        return bp.at[:b.shape[0]].set(b.astype(jnp.float32)).reshape(1, cout_p)

    weights = [pad_w(w, cmax) for (w, _) in params["head"]] + [pad_w(params["cls_w"], cpad)]
    biases = [pad_b(b, cmax) for (_, b) in params["head"]] + [pad_b(params["cls_b"], cpad)]

    out_logits = ()
    for feat, mask in zip(fpn_feats_nct, fpn_masks_b1t):
        # TODO(synk): fold this NCT->NTC transpose into the kernel (in-VMEM transpose).
        x_btc = jnp.transpose(feat, (0, 2, 1))                    # (B, T, C)
        m_b1t = mask.astype(x_btc.dtype)                          # (B, 1, T) lane-dense
        y = _fused_cls_head_level(x_btc, m_b1t, weights, biases)  # (B, cpad, T) NCT
        out_logits += (y[:, :num_classes, :],)
    return out_logits


# ---------------- pure-JAX reference (correctness check) ---------------------
def _ref_masked_conv1d(x, m, w, b, relu):
    K = w.shape[0]
    pad = K // 2
    T = x.shape[1]
    xp = jnp.pad(x, ((0, 0), (pad, pad), (0, 0)))
    y = sum(jnp.einsum("bti,io->bto", xp[:, k:k + T, :], w[k],
                       precision=jax.lax.Precision.HIGHEST)
            for k in range(K)) + b[None, None, :]
    y = y * m
    return jnp.maximum(y, 0.0) if relu else y


def _ref_forward(params, fpn_feats_nct, fpn_masks_b1t):
    outs = ()
    for feat, mask in zip(fpn_feats_nct, fpn_masks_b1t):
        x = jnp.transpose(feat, (0, 2, 1))
        m = jnp.transpose(mask, (0, 2, 1)).astype(x.dtype)
        for w, b in params["head"]:
            x = _ref_masked_conv1d(x, m, w, b, True)
        y = _ref_masked_conv1d(x, m, params["cls_w"], params["cls_b"], False)
        outs += (jnp.transpose(y, (0, 2, 1)),)
    return outs


if __name__ == "__main__":
    key = jax.random.PRNGKey(0)
    B, input_dim, feat_dim, num_classes = 2, 32, 32, 8
    level_lengths = (16, 8)   # two FPN levels

    key, kp = jax.random.split(key)
    params = init_cls_head_params(kp, input_dim, feat_dim, num_classes,
                                  prior_prob=0.01, num_layers=3,
                                  kernel_size=3, empty_cls=())

    fpn_feats, fpn_masks = [], []
    for T in level_lengths:
        key, kf = jax.random.split(key)
        fpn_feats.append(jax.random.normal(kf, (B, input_dim, T), jnp.float32))
        valid_len = jnp.array([T, max(T // 2, 1)], jnp.int32)
        mask = jnp.arange(T)[None, :] < valid_len[:, None]    # (B, T) bool
        fpn_masks.append(mask[:, None, :])                    # (B, 1, T)

    out = pt_transformer_cls_head_forward(params, fpn_feats, fpn_masks)
    out = jax.block_until_ready(out)

    ref = _ref_forward(params, fpn_feats, fpn_masks)
    ref = jax.block_until_ready(ref)
    for o, r in zip(out, ref):
        assert o.shape == r.shape
        assert jnp.allclose(o, r, rtol=2e-2, atol=2e-2), \
            float(jnp.max(jnp.abs(o - r)))

    print("KERNEL_OK")
</pallas_src>

<mosaic_0001>
module attributes {stable_mosaic.version = 11 : i64} {
  func.func @_fused_cls_head_kernel(%arg0: i32, %arg1: memref<1x16x32xf32, #tpu.memory_space<vmem>>, %arg2: memref<1x1x16xf32, #tpu.memory_space<vmem>>, %arg3: memref<3x128x128xbf16, #tpu.memory_space<vmem>>, %arg4: memref<1x128xf32, #tpu.memory_space<vmem>>, %arg5: memref<3x128x128xbf16, #tpu.memory_space<vmem>>, %arg6: memref<1x128xf32, #tpu.memory_space<vmem>>, %arg7: memref<3x128x128xbf16, #tpu.memory_space<vmem>>, %arg8: memref<1x128xf32, #tpu.memory_space<vmem>>, %arg9: memref<1x128x16xf32, #tpu.memory_space<vmem>>, %arg10: memref<40x128xbf16, #tpu.memory_space<vmem>>, %arg11: memref<40x128xbf16, #tpu.memory_space<vmem>>) attributes {dimension_semantics = [#tpu.dimension_semantics<parallel>], iteration_bounds = array<i64: 2>, scalar_prefetch = 0 : i64, scratch_operands = 2 : i64, tpu.core_type = #tpu.core_type<tc>, window_params = [{transform_indices = @transform_0, window_bounds = array<i64: 1, 16, 32>}, {transform_indices = @transform_1, window_bounds = array<i64: 1, 1, 16>}, {pipeline_mode = #tpu.pipeline_mode<synchronous>, transform_indices = @transform_2, window_bounds = array<i64: 3, 128, 128>}, {pipeline_mode = #tpu.pipeline_mode<synchronous>, transform_indices = @transform_3, window_bounds = array<i64: 1, 128>}, {pipeline_mode = #tpu.pipeline_mode<synchronous>, transform_indices = @transform_4, window_bounds = array<i64: 3, 128, 128>}, {pipeline_mode = #tpu.pipeline_mode<synchronous>, transform_indices = @transform_5, window_bounds = array<i64: 1, 128>}, {pipeline_mode = #tpu.pipeline_mode<synchronous>, transform_indices = @transform_6, window_bounds = array<i64: 3, 128, 128>}, {pipeline_mode = #tpu.pipeline_mode<synchronous>, transform_indices = @transform_7, window_bounds = array<i64: 1, 128>}, {transform_indices = @transform_8, window_bounds = array<i64: 1, 128, 16>}]} {
    %c0 = arith.constant 0 : index
    %c0_0 = arith.constant 0 : index
    %c0_1 = arith.constant 0 : index
    %0 = vector.load %arg2[%c0, %c0_0, %c0_1] : memref<1x1x16xf32, #tpu.memory_space<vmem>>, vector<1x1x16xf32>
    %1 = vector.shape_cast %0 : vector<1x1x16xf32> to vector<1x16xf32>
    %2 = tpu.transpose %1, [1, 0] : vector<1x16xf32> -> vector<16x1xf32>
    %cst = arith.constant 0.000000e+00 : bf16
    %3 = vector.broadcast %cst : bf16 to vector<1x128xbf16>
    %c15 = arith.constant 15 : index
    %c0_2 = arith.constant 0 : index
    %4 = vector.load %arg10[%c15, %c0_2] : memref<40x128xbf16, #tpu.memory_space<vmem>>, vector<1x128xbf16>
    tpu.vector_store %arg10[%c15, %c0_2], %3 {strides = array<i32>} : memref<40x128xbf16, #tpu.memory_space<vmem>>, vector<1x128xbf16>,
    %cst_3 = arith.constant 0.000000e+00 : bf16
    %5 = vector.broadcast %cst_3 : bf16 to vector<1x128xbf16>
    %c32 = arith.constant 32 : index
    %c0_4 = arith.constant 0 : index
    %6 = vector.load %arg10[%c32, %c0_4] : memref<40x128xbf16, #tpu.memory_space<vmem>>, vector<1x128xbf16>
    tpu.vector_store %arg10[%c32, %c0_4], %5 {strides = array<i32>} : memref<40x128xbf16, #tpu.memory_space<vmem>>, vector<1x128xbf16>,
    %cst_5 = arith.constant 0.000000e+00 : bf16
    %7 = vector.broadcast %cst_5 : bf16 to vector<1x128xbf16>
    %c15_6 = arith.constant 15 : index
    %c0_7 = arith.constant 0 : index
    %8 = vector.load %arg11[%c15_6, %c0_7] : memref<40x128xbf16, #tpu.memory_space<vmem>>, vector<1x128xbf16>
    tpu.vector_store %arg11[%c15_6, %c0_7], %7 {strides = array<i32>} : memref<40x128xbf16, #tpu.memory_space<vmem>>, vector<1x128xbf16>,
    %cst_8 = arith.constant 0.000000e+00 : bf16
    %9 = vector.broadcast %cst_8 : bf16 to vector<1x128xbf16>
    %c32_9 = arith.constant 32 : index
    %c0_10 = arith.constant 0 : index
    %10 = vector.load %arg11[%c32_9, %c0_10] : memref<40x128xbf16, #tpu.memory_space<vmem>>, vector<1x128xbf16>
    tpu.vector_store %arg11[%c32_9, %c0_10], %9 {strides = array<i32>} : memref<40x128xbf16, #tpu.memory_space<vmem>>, vector<1x128xbf16>,
    %c0_11 = arith.constant 0 : index
    %c0_12 = arith.constant 0 : index
    %c0_13 = arith.constant 0 : index
    %11 = vector.load %arg1[%c0_11, %c0_12, %c0_13] : memref<1x16x32xf32, #tpu.memory_space<vmem>>, vector<1x16x32xf32>
    %12 = vector.shape_cast %11 : vector<1x16x32xf32> to vector<16x32xf32>
    %13 = arith.truncf %12 : vector<16x32xf32> to vector<16x32xbf16>
    %cst_14 = arith.constant 0.000000e+00 : bf16
    %14 = vector.broadcast %cst_14 : bf16 to vector<16x96xbf16>
    %15 = tpu.concatenate %13, %14 in 1 : vector<16x32xbf16>, vector<16x96xbf16> -> vector<16x128xbf16>
    %c16 = arith.constant 16 : index
    %c0_15 = arith.constant 0 : index
    %16 = vector.load %arg10[%c16, %c0_15] : memref<40x128xbf16, #tpu.memory_space<vmem>>, vector<16x128xbf16>
    tpu.vector_store %arg10[%c16, %c0_15], %15 {strides = array<i32>} : memref<40x128xbf16, #tpu.memory_space<vmem>>, vector<16x128xbf16>,
    %c15_16 = arith.constant 15 : index
    %c0_17 = arith.constant 0 : index
    %17 = vector.load %arg10[%c15_16, %c0_17] : memref<40x128xbf16, #tpu.memory_space<vmem>>, vector<16x128xbf16>
    %c0_18 = arith.constant 0 : index
    %c0_19 = arith.constant 0 : index
    %c0_20 = arith.constant 0 : index
    %18 = vector.load %arg3[%c0_18, %c0_19, %c0_20] : memref<3x128x128xbf16, #tpu.memory_space<vmem>>, vector<1x128x128xbf16>
    %19 = vector.shape_cast %18 : vector<1x128x128xbf16> to vector<128x128xbf16>
    %cst_21 = arith.constant dense<0.000000e+00> : vector<16x128xf32>
    %20 = tpu.matmul %17, %19, %cst_21 {dimension_numbers = #tpu.dot_dimension_numbers<[1], [0], [0], [1], [0, 0, 1, 1], [], []>} : vector<16x128xbf16>, vector<128x128xbf16>, vector<16x128xf32> -> vector<16x128xf32>
    %c16_22 = arith.constant 16 : index
    %c0_23 = arith.constant 0 : index
    %21 = vector.load %arg10[%c16_22, %c0_23] : memref<40x128xbf16, #tpu.memory_space<vmem>>, vector<16x128xbf16>
    %c1 = arith.constant 1 : index
    %c0_24 = arith.constant 0 : index
    %c0_25 = arith.constant 0 : index
    %22 = vector.load %arg3[%c1, %c0_24, %c0_25] : memref<3x128x128xbf16, #tpu.memory_space<vmem>>, vector<1x128x128xbf16>
    %23 = vector.shape_cast %22 : vector<1x128x128xbf16> to vector<128x128xbf16>
    %cst_26 = arith.constant dense<0.000000e+00> : vector<16x128xf32>
    %24 = tpu.matmul %21, %23, %cst_26 {dimension_numbers = #tpu.dot_dimension_numbers<[1], [0], [0], [1], [0, 0, 1, 1], [], []>} : vector<16x128xbf16>, vector<128x128xbf16>, vector<16x128xf32> -> vector<16x128xf32>
    %25 = arith.addf %20, %24 : vector<16x128xf32>
    %c17 = arith.constant 17 : index
    %c0_27 = arith.constant 0 : index
    %26 = vector.load %arg10[%c17, %c0_27] : memref<40x128xbf16, #tpu.memory_space<vmem>>, vector<16x128xbf16>
    %c2 = arith.constant 2 : index
    %c0_28 = arith.constant 0 : index
    %c0_29 = arith.constant 0 : index
    %27 = vector.load %arg3[%c2, %c0_28, %c0_29] : memref<3x128x128xbf16, #tpu.memory_space<vmem>>, vector<1x128x128xbf16>
    %28 = vector.shape_cast %27 : vector<1x128x128xbf16> to vector<128x128xbf16>
    %cst_30 = arith.constant dense<0.000000e+00> : vector<16x128xf32>
    %29 = tpu.matmul %26, %28, %cst_30 {dimension_numbers = #tpu.dot_dimension_numbers<[1], [0], [0], [1], [0, 0, 1, 1], [], []>} : vector<16x128xbf16>, vector<128x128xbf16>, vector<16x128xf32> -> vector<16x128xf32>
    %30 = arith.addf %25, %29 : vector<16x128xf32>
    %c0_31 = arith.constant 0 : index
    %c0_32 = arith.constant 0 : index
    %31 = vector.load %arg4[%c0_31, %c0_32] : memref<1x128xf32, #tpu.memory_space<vmem>>, vector<1x128xf32>
    %32 = vector.broadcast %31 : vector<1x128xf32> to vector<16x128xf32>
    %33 = arith.addf %30, %32 : vector<16x128xf32>
    %34 = vector.broadcast %2 : vector<16x1xf32> to vector<16x128xf32>
    %35 = arith.mulf %33, %34 : vector<16x128xf32>
    %cst_33 = arith.constant 0.000000e+00 : f32
    %36 = vector.broadcast %cst_33 : f32 to vector<16x128xf32>
    %37 = arith.maximumf %35, %36 : vector<16x128xf32>
    %38 = arith.truncf %37 : vector<16x128xf32> to vector<16x128xbf16>
    %c16_34 = arith.constant 16 : index
    %c0_35 = arith.constant 0 : index
    %39 = vector.load %arg11[%c16_34, %c0_35] : memref<40x128xbf16, #tpu.memory_space<vmem>>, vector<16x128xbf16>
    tpu.vector_store %arg11[%c16_34, %c0_35], %38 {strides = array<i32>} : memref<40x128xbf16, #tpu.memory_space<vmem>>, vector<16x128xbf16>,
    %c15_36 = arith.constant 15 : index
    %c0_37 = arith.constant 0 : index
    %40 = vector.load %arg11[%c15_36, %c0_37] : memref<40x128xbf16, #tpu.memory_space<vmem>>, vector<16x128xbf16>
    %c0_38 = arith.constant 0 : index
    %c0_39 = arith.constant 0 : index
    %c0_40 = arith.constant 0 : index
    %41 = vector.load %arg5[%c0_38, %c0_39, %c0_40] : memref<3x128x128xbf16, #tpu.memory_space<vmem>>, vector<1x128x128xbf16>
    %42 = vector.shape_cast %41 : vector<1x128x128xbf16> to vector<128x128xbf16>
    %cst_41 = arith.constant dense<0.000000e+00> : vector<16x128xf32>
    %43 = tpu.matmul %40, %42, %cst_41 {dimension_numbers = #tpu.dot_dimension_numbers<[1], [0], [0], [1], [0, 0, 1, 1], [], []>} : vector<16x128xbf16>, vector<128x128xbf16>, vector<16x128xf32> -> vector<16x128xf32>
    %c16_42 = arith.constant 16 : index
    %c0_43 = arith.constant 0 : index
    %44 = vector.load %arg11[%c16_42, %c0_43] : memref<40x128xbf16, #tpu.memory_space<vmem>>, vector<16x128xbf16>
    %c1_44 = arith.constant 1 : index
    %c0_45 = arith.constant 0 : index
    %c0_46 = arith.constant 0 : index
    %45 = vector.load %arg5[%c1_44, %c0_45, %c0_46] : memref<3x128x128xbf16, #tpu.memory_space<vmem>>, vector<1x128x128xbf16>
    %46 = vector.shape_cast %45 : vector<1x128x128xbf16> to vector<128x128xbf16>
    %cst_47 = arith.constant dense<0.000000e+00> : vector<16x128xf32>
    %47 = tpu.matmul %44, %46, %cst_47 {dimension_numbers = #tpu.dot_dimension_numbers<[1], [0], [0], [1], [0, 0, 1, 1], [], []>} : vector<16x128xbf16>, vector<128x128xbf16>, vector<16x128xf32> -> vector<16x128xf32>
    %48 = arith.addf %43, %47 : vector<16x128xf32>
    %c17_48 = arith.constant 17 : index
    %c0_49 = arith.constant 0 : index
    %49 = vector.load %arg11[%c17_48, %c0_49] : memref<40x128xbf16, #tpu.memory_space<vmem>>, vector<16x128xbf16>
    %c2_50 = arith.constant 2 : index
    %c0_51 = arith.constant 0 : index
    %c0_52 = arith.constant 0 : index
    %50 = vector.load %arg5[%c2_50, %c0_51, %c0_52] : memref<3x128x128xbf16, #tpu.memory_space<vmem>>, vector<1x128x128xbf16>
    %51 = vector.shape_cast %50 : vector<1x128x128xbf16> to vector<128x128xbf16>
    %cst_53 = arith.constant dense<0.000000e+00> : vector<16x128xf32>
    %52 = tpu.matmul %49, %51, %cst_53 {dimension_numbers = #tpu.dot_dimension_numbers<[1], [0], [0], [1], [0, 0, 1, 1], [], []>} : vector<16x128xbf16>, vector<128x128xbf16>, vector<16x128xf32> -> vector<16x128xf32>
    %53 = arith.addf %48, %52 : vector<16x128xf32>
    %c0_54 = arith.constant 0 : index
    %c0_55 = arith.constant 0 : index
    %54 = vector.load %arg6[%c0_54, %c0_55] : memref<1x128xf32, #tpu.memory_space<vmem>>, vector<1x128xf32>
    %55 = vector.broadcast %54 : vector<1x128xf32> to vector<16x128xf32>
    %56 = arith.addf %53, %55 : vector<16x128xf32>
    %57 = vector.broadcast %2 : vector<16x1xf32> to vector<16x128xf32>
    %58 = arith.mulf %56, %57 : vector<16x128xf32>
    %cst_56 = arith.constant 0.000000e+00 : f32
    %59 = vector.broadcast %cst_56 : f32 to vector<16x128xf32>
    %60 = arith.maximumf %58, %59 : vector<16x128xf32>
    %61 = arith.truncf %60 : vector<16x128xf32> to vector<16x128xbf16>
    %c16_57 = arith.constant 16 : index
    %c0_58 = arith.constant 0 : index
    %62 = vector.load %arg10[%c16_57, %c0_58] : memref<40x128xbf16, #tpu.memory_space<vmem>>, vector<16x128xbf16>
    tpu.vector_store %arg10[%c16_57, %c0_58], %61 {strides = array<i32>} : memref<40x128xbf16, #tpu.memory_space<vmem>>, vector<16x128xbf16>,
    %c15_59 = arith.constant 15 : index
    %c0_60 = arith.constant 0 : index
    %63 = vector.load %arg10[%c15_59, %c0_60] : memref<40x128xbf16, #tpu.memory_space<vmem>>, vector<16x128xbf16>
    %c0_61 = arith.constant 0 : index
    %c0_62 = arith.constant 0 : index
    %c0_63 = arith.constant 0 : index
    %64 = vector.load %arg7[%c0_61, %c0_62, %c0_63] : memref<3x128x128xbf16, #tpu.memory_space<vmem>>, vector<1x128x128xbf16>
    %65 = vector.shape_cast %64 : vector<1x128x128xbf16> to vector<128x128xbf16>
    %cst_64 = arith.constant dense<0.000000e+00> : vector<16x128xf32>
    %66 = tpu.matmul %63, %65, %cst_64 {dimension_numbers = #tpu.dot_dimension_numbers<[1], [0], [0], [1], [0, 0, 1, 1], [], []>} : vector<16x128xbf16>, vector<128x128xbf16>, vector<16x128xf32> -> vector<16x128xf32>
    %c16_65 = arith.constant 16 : index
    %c0_66 = arith.constant 0 : index
    %67 = vector.load %arg10[%c16_65, %c0_66] : memref<40x128xbf16, #tpu.memory_space<vmem>>, vector<16x128xbf16>
    %c1_67 = arith.constant 1 : index
    %c0_68 = arith.constant 0 : index
    %c0_69 = arith.constant 0 : index
    %68 = vector.load %arg7[%c1_67, %c0_68, %c0_69] : memref<3x128x128xbf16, #tpu.memory_space<vmem>>, vector<1x128x128xbf16>
    %69 = vector.shape_cast %68 : vector<1x128x128xbf16> to vector<128x128xbf16>
    %cst_70 = arith.constant dense<0.000000e+00> : vector<16x128xf32>
    %70 = tpu.matmul %67, %69, %cst_70 {dimension_numbers = #tpu.dot_dimension_numbers<[1], [0], [0], [1], [0, 0, 1, 1], [], []>} : vector<16x128xbf16>, vector<128x128xbf16>, vector<16x128xf32> -> vector<16x128xf32>
    %71 = arith.addf %66, %70 : vector<16x128xf32>
    %c17_71 = arith.constant 17 : index
    %c0_72 = arith.constant 0 : index
    %72 = vector.load %arg10[%c17_71, %c0_72] : memref<40x128xbf16, #tpu.memory_space<vmem>>, vector<16x128xbf16>
    %c2_73 = arith.constant 2 : index
    %c0_74 = arith.constant 0 : index
    %c0_75 = arith.constant 0 : index
    %73 = vector.load %arg7[%c2_73, %c0_74, %c0_75] : memref<3x128x128xbf16, #tpu.memory_space<vmem>>, vector<1x128x128xbf16>
    %74 = vector.shape_cast %73 : vector<1x128x128xbf16> to vector<128x128xbf16>
    %cst_76 = arith.constant dense<0.000000e+00> : vector<16x128xf32>
    %75 = tpu.matmul %72, %74, %cst_76 {dimension_numbers = #tpu.dot_dimension_numbers<[1], [0], [0], [1], [0, 0, 1, 1], [], []>} : vector<16x128xbf16>, vector<128x128xbf16>, vector<16x128xf32> -> vector<16x128xf32>
    %76 = arith.addf %71, %75 : vector<16x128xf32>
    %c0_77 = arith.constant 0 : index
    %c0_78 = arith.constant 0 : index
    %77 = vector.load %arg8[%c0_77, %c0_78] : memref<1x128xf32, #tpu.memory_space<vmem>>, vector<1x128xf32>
    %78 = vector.broadcast %77 : vector<1x128xf32> to vector<16x128xf32>
    %79 = arith.addf %76, %78 : vector<16x128xf32>
    %80 = vector.broadcast %2 : vector<16x1xf32> to vector<16x128xf32>
    %81 = arith.mulf %79, %80 : vector<16x128xf32>
    %82 = tpu.transpose %81, [1, 0] : vector<16x128xf32> -> vector<128x16xf32>
    %c0_79 = arith.constant 0 : index
    %c0_80 = arith.constant 0 : index
    %c0_81 = arith.constant 0 : index
    %83 = vector.load %arg9[%c0_79, %c0_80, %c0_81] : memref<1x128x16xf32, #tpu.memory_space<vmem>>, vector<1x128x16xf32>
    %84 = vector.shape_cast %83 : vector<1x128x16xf32> to vector<128x16xf32>
    %85 = vector.shape_cast %82 : vector<128x16xf32> to vector<1x128x16xf32>
    tpu.vector_store %arg9[%c0_79, %c0_80, %c0_81], %85 {strides = array<i32>} : memref<1x128x16xf32, #tpu.memory_space<vmem>>, vector<1x128x16xf32>,
    return
  }
  func.func @transform_0(%arg0: i32) -> (i32, i32, i32) {
    %c0_i32 = arith.constant 0 : i32
    %c0_i32_0 = arith.constant 0 : i32
    %c0_i32_1 = arith.constant 0 : i32
    return %arg0, %c0_i32, %c0_i32_0 : i32, i32, i32
  }
  func.func @transform_1(%arg0: i32) -> (i32, i32, i32) {
    %c0_i32 = arith.constant 0 : i32
    %c0_i32_0 = arith.constant 0 : i32
    %c0_i32_1 = arith.constant 0 : i32
    return %arg0, %c0_i32, %c0_i32_0 : i32, i32, i32
  }
  func.func @transform_2(%arg0: i32) -> (i32, i32, i32) {
    %c0_i32 = arith.constant 0 : i32
    %c0_i32_0 = arith.constant 0 : i32
    %c0_i32_1 = arith.constant 0 : i32
    %c0_i32_2 = arith.constant 0 : i32
    return %c0_i32, %c0_i32_0, %c0_i32_1 : i32, i32, i32
  }
  func.func @transform_3(%arg0: i32) -> (i32, i32) {
    %c0_i32 = arith.constant 0 : i32
    %c0_i32_0 = arith.constant 0 : i32
    %c0_i32_1 = arith.constant 0 : i32
    return %c0_i32, %c0_i32_0 : i32, i32
  }
  func.func @transform_4(%arg0: i32) -> (i32, i32, i32) {
    %c0_i32 = arith.constant 0 : i32
    %c0_i32_0 = arith.constant 0 : i32
    %c0_i32_1 = arith.constant 0 : i32
    %c0_i32_2 = arith.constant 0 : i32
    return %c0_i32, %c0_i32_0, %c0_i32_1 : i32, i32, i32
  }
  func.func @transform_5(%arg0: i32) -> (i32, i32) {
    %c0_i32 = arith.constant 0 : i32
    %c0_i32_0 = arith.constant 0 : i32
    %c0_i32_1 = arith.constant 0 : i32
    return %c0_i32, %c0_i32_0 : i32, i32
  }
  func.func @transform_6(%arg0: i32) -> (i32, i32, i32) {
    %c0_i32 = arith.constant 0 : i32
    %c0_i32_0 = arith.constant 0 : i32
    %c0_i32_1 = arith.constant 0 : i32
    %c0_i32_2 = arith.constant 0 : i32
    return %c0_i32, %c0_i32_0, %c0_i32_1 : i32, i32, i32
  }
  func.func @transform_7(%arg0: i32) -> (i32, i32) {
    %c0_i32 = arith.constant 0 : i32
    %c0_i32_0 = arith.constant 0 : i32
    %c0_i32_1 = arith.constant 0 : i32
    return %c0_i32, %c0_i32_0 : i32, i32
  }
  func.func @transform_8(%arg0: i32) -> (i32, i32, i32) {
    %c0_i32 = arith.constant 0 : i32
    %c0_i32_0 = arith.constant 0 : i32
    %c0_i32_1 = arith.constant 0 : i32
    return %arg0, %c0_i32, %c0_i32_0 : i32, i32, i32
  }
}

</mosaic_0001>

<bundles_post_ra>
// kernel: tpu_custom_call.1
= control target key start
LH: loop header
LB: loop body
LE: loop exit
PB: predicated region body
PF: predicated region fallthrough
CT: control target
= control target key end

     0   :  { %s2992_s0 = inlined_call_operand.hbm [shape: f32[2,16,32], index: 0, kind: input, shape index: {}]   ;;  %s2993_s1 = inlined_call_operand.hbm [shape: f32[2,1,16], index: 1, kind: input, shape index: {}]   ;;  %s2994_s2 = inlined_call_operand.hbm [shape: bf16[3,128,128], index: 2, kind: input, shape index: {}]   ;;  %s2995_s3 = inlined_call_operand.vmem [shape: f32[1,128], index: 3, kind: input, shape index: {}]   ;;  %s2996_s4 = inlined_call_operand.hbm [shape: bf16[3,128,128], index: 4, kind: input, shape index: {}]   ;;  %s2997_s5 = inlined_call_operand.vmem [shape: f32[1,128], index: 5, kind: input, shape index: {}]   ;;  %s2998_s6 = inlined_call_operand.hbm [shape: bf16[3,128,128], index: 6, kind: input, shape index: {}]   ;;  %s2999_s7 = inlined_call_operand.vmem [shape: f32[1,128], index: 7, kind: input, shape index: {}]   ;;  %s3000_s8 = inlined_call_operand.vmem [shape: f32[2,128,16], index: 8, kind: output, shape index: {}]  }
   0x1   :  { %3004 = sst [smem:[#allocation16_spill]] %s2992_s0 }
   0x2   :  { %3005 = sst [smem:[#allocation17_spill]] %s2994_s2 }
   0x3   :  { %3006 = sst [smem:[#allocation18_spill]] %s2996_s4 }
   0x4   :  { %3007 = sst [smem:[#allocation19_spill]] %s2998_s6 }
   0x5   :  { %13 = vsyncpa [#allocation5], 0 }
   0x6   :  { %15 = vsyncpa [#allocation5 + $0x1], 0 }
   0x7   :  { %16 = vsyncpa [#allocation7], 0 }
   0x8   :  { %18 = vsyncpa [#allocation7 + $0x1], 0 }
   0x9   :  { %19 = vsyncpa [#allocation10], 0  ;;  %s2630_s27 = smov 0   ;;  %s2632_s28 = smov 0  }
   0xa   :  { %s2634_s29 = smov 0   ;;  %s2636_s30 = smov 0  }
   0xb LB: > { %s2649_s9 = sadd.s32 4294967295, %s2571_s30   ;;  %p45_p0 = scmp.ne.s32.totalorder %s2563_s28, %s2559_s27  ;;  %s2571_s30 = sphi %s2636_s30, %s3029_s30   ;;  %s2567_s29 = sphi %s2634_s29, %s3028_s29   ;;  %s2563_s28 = sphi %s2632_s28, %s3027_s28   ;;  %s2559_s27 = sphi %s2630_s27, %s3026_s27  }
   0xc   : > { %p3001_p1 = scmp.eq.s32.totalorder %s2649_s9, 0  ;;  %p1827_p2 = scmp.ge.s32.totalorder %s2571_s30, 1 }
   0xd   : > { %p234_p3 = scmp.lt.s32.totalorder %s2571_s30, 3  ;;  %s2573_s12 = smov [#allocation8]  }
   0xe   : > { %p2657_p4 = por %p3001_p1, %p45_p0  ;;  %s246_s13 = sshll.u32 %s2573_s12, 4  ;;  %s247_s13 = int_to_ptr.vmem [resolvable:$true] %s246_s13 }
   0xf   : > { %p2661_p5 = pnand %p1827_p2, %p234_p3  ;;  %s2574_s15 = smov [#allocation9]  }
  0x10   : > { %s3008_s10 = scalar_select %p2657_p4, 1, 0 }
  0x11   : > { %s3009_s11 = scalar_select %p2661_p5, 1, 0 }
  0x12   : > { %p2236_p6 = pneg %p2661_p5  ;;  %s262_s16 = sshll.u32 %s2574_s15, 4  ;;  %s263_s16 = int_to_ptr.vmem [resolvable:$true] %s262_s16 }
  0x13   : > { %s2575_s17 = smov [#allocation11]   ;;  %s2402_s19 = scalar_lea.vmem %s247_s13, 3072 }
  0x14   : > { %p2669_p7 = pnand %p2236_p6, %p3001_p1  ;;  %s278_s18 = sshll.u32 %s2575_s17, 4  ;;  %s279_s18 = int_to_ptr.vmem [resolvable:$true] %s278_s18 }
  0x15   : > { %p2403_p9 = scmp.ne.s32.totalorder %s247_s13, %s2402_s19  ;;  %p2410_p12 = scmp.lt.s32.totalorder %s247_s13, %s247_s13 }
  0x16   : > { %p2393_p8 = pneg %p2669_p7  ;;  %p2411_p13 = scmp.lt.s32.totalorder %s2402_s19, %s2402_s19 }
  0x18   : > { %p2405_p10 = pnand %p2403_p9, %p2393_p8  ;;  %p2412_p0 = por %p2411_p13, %p2410_p12 }
  0x1a   : > { %p2406_p11 = pneg %p2405_p10 }
  0x1c   : > { %p2413_p2 = pnand %p2412_p0, %p2406_p11 }
  0x1e   : > { %2416 = shalt.err (!%p2413_p2)
}
  0x1f   : > { %s2576_s20 = smov 64   ;;  %s2577_s21 = smov 4  }
  0x20   : > { %s3011_s2 = sld [smem:[#allocation17_spill]]  ;;  %s2428_s24 = scalar_lea.vmem %s263_s16, 3072 }
  0x21   : > { %p2429_p3 = scmp.ne.s32.totalorder %s263_s16, %s2428_s24  ;;  %p2436_p10 = scmp.lt.s32.totalorder %s263_s16, %s263_s16 }
  0x22   : > { %p2437_p1 = scmp.lt.s32.totalorder %s2428_s24, %s2428_s24 }
  0x23   : > { %p2431_p6 = pnand %p2429_p3, %p2393_p8 }
  0x24   : > { %p2438_p12 = por %p2437_p1, %p2436_p10 }
  0x25   : > { %p2432_p9 = pneg %p2431_p6 }
  0x26   : > { %2239 = dma.hbm_to_vmem [thread:$0]  (!%p2669_p7), %s3011_s2, 3072, %s247_s13, [#allocation7], %s2576_s20, %s2576_s20, %s2577_s21  }
  0x27   : > { %p2439_p11 = pnand %p2438_p12, %p2432_p9 }
  0x29   : > { %2442 = shalt.err (!%p2439_p11)
}
  0x2a   : > { %s3012_s4 = sld [smem:[#allocation18_spill]]  ;;  %s2454_s27 = scalar_lea.vmem %s279_s18, 3072 }
  0x2b   : > { %p2455_p13 = scmp.ne.s32.totalorder %s279_s18, %s2454_s27  ;;  %p2462_p3 = scmp.lt.s32.totalorder %s279_s18, %s279_s18 }
  0x2c   : > { %p2463_p6 = scmp.lt.s32.totalorder %s2454_s27, %s2454_s27 }
  0x2d   : > { %p2457_p0 = pnand %p2455_p13, %p2393_p8 }
  0x2e   : > { %p2464_p4 = por %p2463_p6, %p2462_p3 }
  0x2f   : > { %p2458_p2 = pneg %p2457_p0 }
  0x30   : > { %2242 = dma.hbm_to_vmem [thread:$0]  (!%p2669_p7), %s3012_s4, 3072, %s263_s16, [#allocation10], %s2576_s20, %s2576_s20, %s2577_s21  }
  0x31   : > { %p2465_p1 = pnand %p2464_p4, %p2458_p2 }
  0x33   : > { %2468 = shalt.err (!%p2465_p1)
}
  0x34   : > { %s3013_s6 = sld [smem:[#allocation19_spill]]  ;;  %s2700_s15 = sadd.s32 1, %s2571_s30  }
  0x35   : > { %s29_s16 = ssub.s32 %s2571_s30, %s2700_s15  ;;  %s32_s14 = sadd.s32 1, %s2567_s29 }
  0x36   : > { %p30_p4 = scmp.eq.s32.totalorder %s29_s16, 0  ;;  %p39_p8 = scmp.ne.s32.totalorder %s2567_s29, %s2563_s28 }
  0x37   : > { %p40_p9 = scmp.eq.s32.totalorder %s2571_s30, 0  ;;  %p2256_p10 = scmp.lt.s32.totalorder %s2571_s30, 2 }
  0x38   : > { %s2710_s17 = scalar_select %p30_p4, %s2567_s29, %s32_s14  }
  0x39   : > { %p41_p12 = por %p40_p9, %p39_p8  ;;  %s2713_s19 = sand.u32 1, %s2567_s29  }
  0x3a   : > { %2245 = dma.hbm_to_vmem [thread:$0]  (!%p2669_p7), %s3013_s6, 3072, %s279_s18, [#allocation10], %s2576_s20, %s2576_s20, %s2577_s21  }
  0x3b   : > { %s1832_s22 = sshll.u32 %s2713_s19, 4  ;;  %s1941_s23 = sshll.u32 %s2571_s30, 8 }
  0x3c   : > { %s3014_s0 = sld [smem:[#allocation16_spill]]  ;;  %s299_s24 = scalar_lea.vmem [#allocation4], %s1832_s22 }
  0x3d   : > { %s306_s25 = sshll.u32 %s299_s24, 4  ;;  %p2724_p7 = pnand %p2256_p10, %p41_p12  ;;  %s2722_s25 = int_to_ptr.vmem [resolvable:$true] %s306_s25 }
  0x3e   : > { %s316_s27 = sand.u32 1, %s2571_s30   ;;  %s296_s12 = scalar_lea.sflag [#allocation5], %s2713_s19 }
  0x3f   : > { %p2471_p13 = pneg %p2724_p7 }
  0x42   : > { %s2720_s21 = scalar_lea.hbm %s3014_s0, %s1941_s23  ;;  %s2474_s22 = scalar_lea.hbm %s3014_s0, 512 }
  0x43   : > { %s2469_s13 = scalar_lea.hbm %s2720_s21, 256  ;;  %p2475_p3 = scmp.lt.s32.totalorder %s2720_s21, %s3014_s0 }
  0x44   : > { %p2470_p11 = scmp.ne.s32.totalorder %s2720_s21, %s2469_s13  ;;  %p2476_p6 = scmp.lt.s32.totalorder %s2474_s22, %s2469_s13 }
  0x46   : > { %p2472_p0 = pnand %p2471_p13, %p2470_p11  ;;  %p2477_p1 = por %p2476_p6, %p2475_p3 }
  0x48   : > { %p2473_p2 = pneg %p2472_p0 }
  0x4a   : > { %p2478_p4 = pnand %p2477_p1, %p2473_p2 }
  0x4c   : > { %2481 = shalt.err (!%p2478_p4)
}
  0x4d   : > { %s2482_s20 = scalar_lea.vmem %s2722_s25, 256  ;;  %s2578_s24 = smov [#allocation4]  }
  0x4e   : > { %p2483_p8 = scmp.ne.s32.totalorder %s2722_s25, %s2482_s20  ;;  %s2487_s16 = sshll.u32 %s2578_s24, 4  ;;  %s2488_s16 = int_to_ptr.vmem [resolvable:$false] %s2487_s16 }
  0x4f   : > { %s2489_s14 = scalar_lea.vmem %s2488_s16, 512  ;;  %p2490_p12 = scmp.lt.s32.totalorder %s2722_s25, %s2488_s16 }
  0x50   : > { %p2485_p9 = pnand %p2483_p8, %p2471_p13  ;;  %p2491_p11 = scmp.lt.s32.totalorder %s2489_s14, %s2482_s20 }
  0x52   : > { %p2486_p10 = pneg %p2485_p9  ;;  %p2492_p0 = por %p2491_p11, %p2490_p12 }
  0x54   : > { %p2493_p3 = pnand %p2492_p0, %p2486_p10 }
  0x56   : > { %2496 = shalt.err (!%p2493_p3)
}
  0x57   : > { %s2579_s13 = smov 128   ;;  %s2580_s22 = smov 8  }
  0x58   : > { %2249 = dma.hbm_to_vmem [thread:$0]  (!%p2724_p7), %s2720_s21, 256, %s2722_s25, %s296_s12, %s2579_s13, %s2579_s13, %s2580_s22  }
  0x59   : > { %s1835_s23 = sshll.u32 %s2571_s30, 4  ;;  %s319_s18 = scalar_lea.vmem [#allocation6], %s2713_s19 }
  0x5a   : > { %s326_s24 = sshll.u32 %s319_s18, 4  ;;  %s324_s14 = scalar_lea.hbm %s2993_s1, %s1835_s23  ;;  %s327_s24 = int_to_ptr.vmem [resolvable:$true] %s326_s24 }
  0x5b   : > { %s317_s0 = scalar_lea.sflag [#allocation7], %s316_s27  ;;  %s2497_s2 = scalar_lea.hbm %s324_s14, 16 }
  0x5c   : > { %p2498_p2 = scmp.ne.s32.totalorder %s324_s14, %s2497_s2  ;;  %s2502_s21 = scalar_lea.hbm %s2993_s1, 32 }
  0x5d   : > { %p2503_p4 = scmp.lt.s32.totalorder %s324_s14, %s2993_s1  ;;  %p2504_p8 = scmp.lt.s32.totalorder %s2502_s21, %s2497_s2 }
  0x5e   : > { %p2500_p6 = pnand %p2498_p2, %p2471_p13 }
  0x5f   : > { %p2505_p9 = por %p2504_p8, %p2503_p4 }
  0x60   : > { %p2501_p1 = pneg %p2500_p6 }
  0x62   : > { %p2506_p10 = pnand %p2505_p9, %p2501_p1 }
  0x64   : > { %2509 = shalt.err (!%p2506_p10)
}
  0x65   : > { %s2510_s30 = scalar_lea.vmem %s327_s24, 16  ;;  %s2581_s27 = smov [#allocation6]  }
  0x66   : > { %p2511_p12 = scmp.ne.s32.totalorder %s327_s24, %s2510_s30  ;;  %s2515_s12 = sshll.u32 %s2581_s27, 4  ;;  %s2516_s12 = int_to_ptr.vmem [resolvable:$false] %s2515_s12 }
  0x67   : > { %s2517_s4 = scalar_lea.vmem %s2516_s12, 32  ;;  %p2518_p3 = scmp.lt.s32.totalorder %s327_s24, %s2516_s12 }
  0x68   : > { %p2513_p11 = pnand %p2511_p12, %p2471_p13  ;;  %p2519_p2 = scmp.lt.s32.totalorder %s2517_s4, %s2510_s30 }
  0x6a   : > { %p2514_p0 = pneg %p2513_p11  ;;  %p2520_p6 = por %p2519_p2, %p2518_p3 }
  0x6c   : > { %p2521_p5 = pnand %p2520_p6, %p2514_p0 }
  0x6e   : > { %2524 = shalt.err (!%p2521_p5)
}
  0x6f   : > { %2252 = dma.hbm_to_vmem [thread:$0]  (!%p2724_p7), %s324_s14, 16, %s327_s24, %s317_s0  }
  0x70   : > { %p3016_p1 = scmp.ne.s32.totalorder %s3009_s11, 0 }
  0x71   : > { %s2780_s2 = sand.u32 (!%p3016_p1), 1, %s2563_s28   ;;  %p3017_p13 = scmp.ne.s32.totalorder (!%p3016_p1), %s3008_s10, 0 }
  0x72   : > { %335 = sbr.rel (%p3016_p1) target bundleno = 1078 (0x436), region = 52  ;;  %s1837_s6 = sshll.u32 (!%p3016_p1), %s2780_s2, 4 }
  0x73   : > { %s338_s13 = scalar_lea.sflag (!%p3016_p1), [#allocation5], %s2780_s2  ;;  %s2784_s22 = scalar_lea.vmem (!%p3016_p1), [#allocation4], %s1837_s6 }
  0x77   : > { %2542 = dma.done.wait (%p3017_p13), %s338_s13, 256  }
  0x78   : > { %2544 = vsyncadd (%p3017_p13), %s338_s13, 4294967040  ;;  %s346_s0 = sand.u32 1, %s2649_s9   ;;  %s349_s26 = scalar_lea.vmem [#allocation6], %s2780_s2 }
  0x79   : > { %s347_s11 = scalar_lea.sflag [#allocation7], %s346_s0 }
  0x7a   : > { %2546 = dma.done.wait (%p3017_p13), %s347_s11, 16  }
  0x7b   : > { %2548 = vsyncadd (%p3017_p13), %s347_s11, 4294967280  ;;  %p3018_p5 = scmp.eq.s32.totalorder %s2649_s9, 0 }
  0x7d   : > { %2550 = dma.done.wait (%p3018_p5), [#allocation7], 3072   ;;  %p3019_p7 = pmov %p3018_p5 }
  0x7e   : > { %p3020_p4 = pmov %p3018_p5 }
  0x7f   : > { %2552 = vsyncadd (%p3019_p7), [#allocation7], 4294964224 }
  0x80   : > { %2554 = dma.done.wait (%p3020_p4), [#allocation10], 6144   ;;  %p3021_p8 = pmov %p3020_p4 }
  0x81   : > { %v2582_v0 = vmov 0.0   ;;  %vm2583_vm0 = vmmov 0   ;;  %v2584_v1 = vmov 0   ;;  %v2304_v2 = vld [vmem:[#allocation8 + $0x78] sm:$0xff]   ;;  %v2306_v4 = vld [vmem:[#allocation8 + $0x70] sm:$0xff]   ;;  %v2308_v6 = vld [vmem:[#allocation8 + $0x68] sm:$0xff]  }
  0x82   : > { %2556 = vsyncadd (%p3021_p8), [#allocation10], 4294961152  ;;  %2040 = vmatprep.subr.bf16.mxu0 %v2582_v0  ;;  %2060 = vmatprep.subr.bf16.mxu1 %v2582_v0  ;;  %v2305_v3 = vld [vmem:[#allocation8 + $0x38] sm:$0xff]   ;;  %v2307_v5 = vld [vmem:[#allocation8 + $0x30] sm:$0xff]   ;;  %vm438_vm1 = vsmask.f32 7950 }
  0x83   : > { %2056 = vmatprep.mubr.msk.bf16.mxu0 %vm2583_vm0, %v2582_v0  ;;  %2076 = vmatprep.mubr.msk.bf16.mxu1 %vm2583_vm0, %v2582_v0  ;;  %v404_v7 = vld [vmem:[%s349_s26] sm:$0x1]  ;;  %v2309_v8 = vld [vmem:[#allocation8 + $0x28] sm:$0xff]   ;;  %v2310_v9 = vld [vmem:[#allocation8 + $0x60] sm:$0xff]   ;;  %vm437_vm2 = vcmask 1043459   ;;  %vm458_vm4 = vcmask 261120  }
  0x84   : > { %2303 = vset.pattern.permute.xlu1 %v2584_v1  ;;  %2041 = vmatpush3.bf16.msra.mxu0 %v2304_v2  ;;  %v2311_v10 = vld [vmem:[#allocation8 + $0x20] sm:$0xff]   ;;  %vm2817_vm3 = vmand %vm437_vm2, %vm438_vm1  ;;  %v2312_v12 = vld [vmem:[#allocation8 + $0x58] sm:$0xff]   ;;  %vm444_vm5 = vsmask.f32 256  ;;  %vm443_vm6 = vcmask 1040384   ;;  %p398_p9 = scmp.lt.s32.totalorder %s2649_s9, 1 }
  0x85   : > { %2061 = vmatpush3.bf16.msra.mxu1 %v2305_v3  ;;  %2042 = vmatprep.subr.bf16.mxu0 %v2582_v0  ;;  %v2313_v13 = vld [vmem:[#allocation8 + $0x18] sm:$0xff]   ;;  %v2314_v18 = vld [vmem:[#allocation8 + $0x50] sm:$0xff]   ;;  %vm2830_vm7 = vmand %vm443_vm6, %vm444_vm5  ;;  %vm606_vm8 = vsmask.f32 4352  ;;  %vm742_vm9 = vsmask.f32 7424 }
  0x86   : > { %2062 = vmatprep.subr.bf16.mxu1 %v2582_v0  ;;  %405 = vxpose.xlu0.b32.start.end [1/1] (short) (narrow) %v404_v7, 16  ;;  %v440_v14 = vld [vmem:[#allocation2 + $0x4] sm:$0x8]  ;;  %v455_v15 = vld [vmem:[%s2784_s22] sm:$0xff]  ;;  %v446_v28 = vld [vmem:[#allocation2 + $0x10] sm:$0x1] }
  0x87   : > { %v441_v16 = vsel %vm2817_vm3, 0, %v440_v14  ;;  %v456_v17 = vld [vmem:[%s2784_s22 + $0x8] sm:$0xff]  ;;  %v447_v31 = vsel %vm2830_vm7, 0, %v446_v28  ;;  %s3031_s9 = smov (!%p398_p9, %s2649_s9), 1  ;;  %vm1694_vm10 = vcmask 130048  }
  0x88   : > { %2043 = vmatpush3.bf16.msra.mxu0 %v2306_v4  ;;  %442 = vst [vmem:[#allocation2 + $0x4] sm:$0x8] %v441_v16  ;;  %v457_v19 = vpack.c.bf16 %v456_v17, %v455_v15  ;;  %v2315_v20 = vld [vmem:[#allocation8 + $0x10] sm:$0xff]   ;;  %v2316_v25 = vld [vmem:[#allocation8 + $0x48] sm:$0xff]   ;;  %v2318_v27 = vld [vmem:[#allocation8 + $0x40] sm:$0xff]   ;;  %s1942_s14 = sshll.u32 %s3031_s9, 7 }
  0x89   : > { %2063 = vmatpush3.bf16.msra.mxu1 %v2307_v5  ;;  %2044 = vmatprep.subr.bf16.mxu0 %v2582_v0  ;;  %v2317_v26 = vld [vmem:[#allocation8 + $0x8] sm:$0xff]   ;;  %v2319_v29 = vld [vmem:[#allocation8] sm:$0xff]   ;;  %448 = vst [vmem:[#allocation2 + $0x10] sm:$0x1] %v447_v31  ;;  %v2323_v32 = vld [vmem:[#allocation8 + $0xb8] sm:$0xff]   ;;  %s2945_s19 = scalar_lea.vmem %s3000_s8, %s1942_s14 }
  0x8a   : > { %2064 = vmatprep.subr.bf16.mxu1 %v2582_v0  ;;  %v461_v21 = vsel %vm458_vm4, %v457_v19, 0  ;;  %v2324_v39 = vld [vmem:[#allocation8 + $0xb0] sm:$0xff]   ;;  %v2325_v50 = vld [vmem:[#allocation8 + $0xa8] sm:$0xff]   ;;  %v2326_v58 = vld [vmem:[#allocation8 + $0xa0] sm:$0xff]  }
  0x8b   : > { %v1843_v22 = vcombine.low %v461_v21, %v461_v21  ;;  %v1844_v23 = vcombine.high %v461_v21, %v461_v21  ;;  %v2327_v59 = vld [vmem:[#allocation8 + $0x98] sm:$0xff]   ;;  %v2328_v60 = vld [vmem:[#allocation8 + $0x90] sm:$0xff]   ;;  %v2329_v61 = vld [vmem:[#allocation8 + $0x88] sm:$0xff]  }
  0x8c   : > { %2045 = vmatpush3.bf16.msra.mxu0 %v2308_v6  ;;  %v2330_v62 = vld [vmem:[#allocation8 + $0x80] sm:$0xff]   ;;  %v2334_v3 = vld [vmem:[#allocation9 + $0x70] sm:$0xff]   ;;  %v2335_v5 = vld [vmem:[#allocation9 + $0x68] sm:$0xff]  }
  0x8d   : > { %2065 = vmatpush3.bf16.msra.mxu1 %v2309_v8  ;;  %2046 = vmatprep.subr.bf16.mxu0 %v2582_v0  ;;  %469 = vst [vmem:[#allocation2 + $0x8] sm:$0xf] %v1843_v22  ;;  %470 = vst [vmem:[#allocation2 + $0xc] sm:$0xf] %v1844_v23  ;;  %v2336_v6 = vld [vmem:[#allocation9 + $0x38] sm:$0xff]   ;;  %v2337_v8 = vld [vmem:[#allocation9 + $0x60] sm:$0xff]  }
  0x8e   : > { %2066 = vmatprep.subr.bf16.mxu1 %v2582_v0  ;;  %v2342_v14 = vld [vmem:[#allocation9 + $0x20] sm:$0xff]   ;;  %v449_v15 = vld [vmem:[#allocation3 + $0x4] sm:$0x8]  ;;  %v2343_v17 = vld [vmem:[#allocation9 + $0x48] sm:$0xff]  }
  0x8f   : > { %v471_v30 = vld [vmem:[#allocation2 + $0x4] sm:$0x8]  ;;  %v450_v16 = vsel %vm2817_vm3, 0, %v449_v15  ;;  %v452_v19 = vld [vmem:[#allocation3 + $0x10] sm:$0x1]  ;;  %v2345_v21 = vld [vmem:[#allocation9 + $0x40] sm:$0xff]  }
  0x90   : > { %2047 = vmatpush3.bf16.msra.mxu0 %v2310_v9  ;;  %v2332_v44 = vld [vmem:[#allocation2 + $0x10] ss:$0 sps:$4 sm:$0x11]   ;;  %v2338_v9 = vld [vmem:[#allocation9 + $0x30] sm:$0xff]   ;;  %451 = vst [vmem:[#allocation3 + $0x4] sm:$0x8] %v450_v16 }
  0x91   : > { %2067 = vmatpush3.bf16.msra.mxu1 %v2311_v10  ;;  %2048 = vmatprep.subr.bf16.mxu0 %v2582_v0  ;;  %v751_v52 = vshll.u32 %v2332_v44, 16  ;;  %v2339_v10 = vld [vmem:[#allocation9 + $0x58] sm:$0xff]   ;;  %v2346_v22 = vld [vmem:[#allocation9 + $0x10] sm:$0xff]   ;;  %v2350_v11 = vld [vmem:[#allocation9 + $0x8] sm:$0xff]  }
  0x92   : > { %2068 = vmatprep.subr.bf16.mxu1 %v2582_v0  ;;  %v2352_v23 = vld [vmem:[#allocation9] sm:$0xff]  }
  0x93   : > { %v753_v56 = vrot.slane %v751_v52, 1 }
  0x94   : > { %2049 = vmatpush3.bf16.msra.mxu0 %v2312_v12  ;;  %v472_v33 = vld [vmem:[#allocation2 + $0x8] sm:$0xf]  ;;  %v473_v34 = vld [vmem:[#allocation2 + $0xc] sm:$0xf]  ;;  %v2340_v12 = vld [vmem:[#allocation9 + $0x28] sm:$0xff]  }
  0x95   : > { %2069 = vmatpush3.bf16.msra.mxu1 %v2313_v13  ;;  %2050 = vmatprep.subr.bf16.mxu0 %v2582_v0  ;;  %v1845_v35 = vcombine.low %v472_v33, %v473_v34  ;;  %v1854_v36 = vcombine.low %v471_v30, %v472_v33  ;;  %v1855_v37 = vcombine.low %v473_v34, %v473_v34  ;;  %v2331_v38 = vld [vmem:[#allocation2 + $0x8] sm:$0xff]   ;;  %v2341_v13 = vld [vmem:[#allocation9 + $0x50] sm:$0xff]  }
  0x96   : > { %2070 = vmatprep.subr.bf16.mxu1 %v2582_v0  ;;  %v744_v45 = vshrl.u32 %v2331_v38, 16  ;;  %v746_v51 = vshll.u32 %v2331_v38, 16  ;;  %v1874_v34 = vld [vmem:[%s2995_s3] ss:$0 sm:$0xff] }
  0x97   : > { %v608_v40 = vshrl.u32 %v1854_v36, 16  ;;  %v611_v41 = vshll.u32 %v1854_v36, 16  ;;  %v616_v42 = vshrl.u32 %v1855_v37, 16  ;;  %v619_v43 = vshll.u32 %v1855_v37, 16 }
  0x98   : > { %2051 = vmatpush3.bf16.msra.mxu0 %v2314_v18  ;;  %v748_v55 = vrot.slane %v746_v51, 1  ;;  %v2344_v18 = vld [vmem:[#allocation9 + $0x18] sm:$0xff]  }
  0x99   : > { %2071 = vmatpush3.bf16.msra.mxu1 %v2315_v20  ;;  %2052 = vmatprep.subr.bf16.mxu0 %v2582_v0  ;;  %v610_v46 = vrot.slane %v608_v40, 3  ;;  %v613_v47 = vrot.slane %v611_v41, 4  ;;  %v618_v48 = vrot.slane %v616_v42, 3  ;;  %v621_v49 = vrot.slane %v619_v43, 4  ;;  %v2351_v51 = vld [vmem:[#allocation9 + $0xb8] sm:$0xff]  }
  0x9a   : > { %2072 = vmatprep.subr.bf16.mxu1 %v2582_v0  ;;  %v749_v63 = vor.u32 %v748_v55, %v744_v45  ;;  %v453_v20 = vsel %vm2830_vm7, 0, %v452_v19 }
  0x9b   : > { %v614_v53 = vor.u32 %v613_v47, %v610_v46  ;;  %v622_v54 = vor.u32 %v621_v49, %v618_v48  ;;  %454 = vst [vmem:[#allocation3 + $0x10] sm:$0x1] %v453_v20 }
  0x9c   : > { %2053 = vmatpush3.bf16.msra.mxu0 %v2316_v25  ;;  %v754_v2 = vsel %vm742_vm9, %v749_v63, %v753_v56 }
  0x9d   : > { %2073 = vmatpush3.bf16.msra.mxu1 %v2317_v26  ;;  %2054 = vmatprep.subr.bf16.mxu0 %v2582_v0  ;;  %v623_v57 = vsel %vm606_vm8, %v614_v53, %v622_v54 }
  0x9e   : > { %2074 = vmatprep.subr.bf16.mxu1 %v2582_v0 }
  0xa0   : > { %2055 = vmatpush3.bf16.msra.mxu0 %v2318_v27 }
  0xa1   : > { %2075 = vmatpush3.bf16.msra.mxu1 %v2319_v29  ;;  %2080 = vmatprep.subr.bf16.mxu0 %v2582_v0 }
  0xa2   : > { %2100 = vmatprep.subr.bf16.mxu1 %v2582_v0 }
  0xa3   : > { %2057 = vmatmul.mubr.bf16.vlgmr.msra.gmra.mxu0 %v1845_v35 }
  0xa4   : > { %2081 = vmatpush3.bf16.msra.mxu0 %v2323_v32  ;;  %2096 = vmatprep.mubr.msk.bf16.mxu0 %vm2583_vm0, %v2582_v0 }
  0xa5   : > { %2082 = vmatprep.subr.bf16.mxu0 %v2582_v0  ;;  %2077 = vmatmul.mubr.bf16.vlgmr.msra.gmra.mxu1 %v623_v57 }
  0xa6   : > { %2116 = vmatprep.mubr.msk.bf16.mxu1 %vm2583_vm0, %v2582_v0 }
  0xa8   : > { %2083 = vmatpush3.bf16.msra.mxu0 %v2324_v39 }
  0xa9   : > { %2084 = vmatprep.subr.bf16.mxu0 %v2582_v0 }
  0xac   : > { %2085 = vmatpush3.bf16.msra.mxu0 %v2325_v50  ;;  %v880_v50 = vld [vmem:[#allocation3 + $0x4] sm:$0x8] }
  0xad   : > { %2086 = vmatprep.subr.bf16.mxu0 %v2582_v0 }
  0xaf   : > { %2302 = vset.pattern.permute.xlu0 %v2584_v1  ;;  %v2333_v1 = vld [vmem:[#allocation9 + $0x78] sm:$0xff]  }
  0xb0   : > { %2087 = vmatpush3.bf16.msra.mxu0 %v2326_v58  ;;  %2101 = vmatpush3.bf16.msra.mxu1 %v2333_v1 }
  0xb1   : > { %2088 = vmatprep.subr.bf16.mxu0 %v2582_v0  ;;  %2102 = vmatprep.subr.bf16.mxu1 %v2582_v0 }
  0xb4   : > { %2089 = vmatpush3.bf16.msra.mxu0 %v2327_v59  ;;  %2103 = vmatpush3.bf16.msra.mxu1 %v2334_v3 }
  0xb5   : > { %2090 = vmatprep.subr.bf16.mxu0 %v2582_v0  ;;  %2104 = vmatprep.subr.bf16.mxu1 %v2582_v0 }
  0xb8   : > { %2091 = vmatpush3.bf16.msra.mxu0 %v2328_v60  ;;  %2105 = vmatpush3.bf16.msra.mxu1 %v2335_v5  ;;  %v2354_v5 = vld [vmem:[#allocation9 + $0xa8] sm:$0xff]  }
  0xb9   : > { %2092 = vmatprep.subr.bf16.mxu0 %v2582_v0  ;;  %2106 = vmatprep.subr.bf16.mxu1 %v2582_v0 }
  0xbc   : > { %2093 = vmatpush3.bf16.msra.mxu0 %v2329_v61  ;;  %2107 = vmatpush3.bf16.msra.mxu1 %v2337_v8  ;;  %v2353_v61 = vld [vmem:[#allocation9 + $0xb0] sm:$0xff]   ;;  %v2356_v8 = vld [vmem:[#allocation9 + $0x98] sm:$0xff]  }
  0xbd   : > { %2094 = vmatprep.subr.bf16.mxu0 %v2582_v0  ;;  %2108 = vmatprep.subr.bf16.mxu1 %v2582_v0 }
  0xc0   : > { %2095 = vmatpush3.bf16.msra.mxu0 %v2330_v62  ;;  %2109 = vmatpush3.bf16.msra.mxu1 %v2339_v10  ;;  %v2357_v10 = vld [vmem:[#allocation9 + $0x90] sm:$0xff]  }
  0xc1   : > { %2120 = vmatprep.subr.bf16.mxu0 %v2582_v0  ;;  %2110 = vmatprep.subr.bf16.mxu1 %v2582_v0 }
  0xc3   : > { %2097 = vmatmul.mubr.bf16.vlgmr.msra.gmra.mxu0 %v754_v2 }
  0xc4   : > { %2136 = vmatprep.mubr.msk.bf16.mxu0 %vm2583_vm0, %v2582_v0  ;;  %2121 = vmatpush3.bf16.msra.mxu0 %v2336_v6 }
  0xc5   : > { %2122 = vmatprep.subr.bf16.mxu0 %v2582_v0  ;;  %2111 = vmatpush3.bf16.msra.mxu1 %v2341_v13 }
  0xc6   : > { %2112 = vmatprep.subr.bf16.mxu1 %v2582_v0 }
  0xc8   : > { %2123 = vmatpush3.bf16.msra.mxu0 %v2338_v9 }
  0xc9   : > { %2124 = vmatprep.subr.bf16.mxu0 %v2582_v0  ;;  %2113 = vmatpush3.bf16.msra.mxu1 %v2343_v17  ;;  %v2359_v17 = vld [vmem:[#allocation9 + $0x80] sm:$0xff]  }
  0xca   : > { %2114 = vmatprep.subr.bf16.mxu1 %v2582_v0 }
  0xcc   : > { %2125 = vmatpush3.bf16.msra.mxu0 %v2340_v12  ;;  %v2361_v12 = vld [vmem:[#allocation3 + $0x10] ss:$0 sps:$4 sm:$0x11]  }
  0xcd   : > { %2126 = vmatprep.subr.bf16.mxu0 %v2582_v0  ;;  %2115 = vmatpush3.bf16.msra.mxu1 %v2345_v21  ;;  %v1158_v16 = vshll.u32 %v2361_v12, 16  ;;  %v2382_v12 = vld [vmem:[#allocation11 + $0xb0] sm:$0xff]  }
  0xce   : > { %2140 = vmatprep.subr.bf16.mxu1 %v2582_v0 }
  0xcf   : > { %v1160_v20 = vrot.slane %v1158_v16, 1 }
  0xd0   : > { %2127 = vmatpush3.bf16.msra.mxu0 %v2342_v14  ;;  %v2358_v14 = vld [vmem:[#allocation9 + $0x88] sm:$0xff]  }
  0xd1   : > { %2128 = vmatprep.subr.bf16.mxu0 %v2582_v0 }
  0xd4   : > { %2129 = vmatpush3.bf16.msra.mxu0 %v2344_v18 }
  0xd5   : > { %2130 = vmatprep.subr.bf16.mxu0 %v2582_v0 }
  0xd8   : > { %2131 = vmatpush3.bf16.msra.mxu0 %v2346_v22  ;;  %v2362_v22 = vld [vmem:[#allocation11 + $0x78] sm:$0xff]  }
  0xd9   : > { %2132 = vmatprep.subr.bf16.mxu0 %v2582_v0 }
  0xdc   : > { %2133 = vmatpush3.bf16.msra.mxu0 %v2350_v11  ;;  %v2363_v11 = vld [vmem:[#allocation11 + $0x70] sm:$0xff]  }
  0xdd   : > { %2134 = vmatprep.subr.bf16.mxu0 %v2582_v0 }
  0xe0   : > { %2135 = vmatpush3.bf16.msra.mxu0 %v2352_v23  ;;  %v2364_v23 = vld [vmem:[#allocation11 + $0x68] sm:$0xff]  }
  0xe1   : > { %2160 = vmatprep.subr.bf16.mxu0 %v2582_v0 }
 0x102   : > { %v421_v4 = vpop.trf.xlu0 }
 0x103   : > { %858 = vperm.xlu0 %2302, %v421_v4  }
 0x106   : > { %v422_v7 = vpop.trf.xlu0 }
 0x107   : > { %863 = vperm.xlu1 %2303, %v422_v7   ;;  %v2355_v7 = vld [vmem:[#allocation9 + $0xa0] sm:$0xff]  }
 0x163   : > { %v595_v24 = vpop.f32.mrf.mxu0 }
 0x165   : > { %v2058_v25 = vpop.f32.mrf.mxu0  ;;  %v707_v28 = vpop.f32.mrf.mxu1 }
 0x166   : > { %v708_v32 = vadd.f32 %v707_v28, %v595_v24  ;;  %v2365_v24 = vld [vmem:[#allocation11 + $0x38] sm:$0xff]   ;;  %v2366_v25 = vld [vmem:[#allocation11 + $0x60] sm:$0xff]   ;;  %v2369_v28 = vld [vmem:[#allocation11 + $0x28] sm:$0xff]  }
 0x167   : > { %v598_v26 = vpop.f32.mrf.mxu0  ;;  %v2078_v29 = vpop.f32.mrf.mxu1 }
 0x168   : > { %v2370_v29 = vld [vmem:[#allocation11 + $0x50] sm:$0xff]  }
 0x169   : > { %v2059_v27 = vpop.f32.mrf.mxu0  ;;  %v710_v30 = vpop.f32.mrf.mxu1 }
 0x16a   : > { %v711_v37 = vadd.f32 %v710_v30, %v598_v26  ;;  %v2367_v26 = vld [vmem:[#allocation11 + $0x30] sm:$0xff]   ;;  %v2368_v27 = vld [vmem:[#allocation11 + $0x58] sm:$0xff]   ;;  %v2371_v30 = vld [vmem:[#allocation11 + $0x20] sm:$0xff]  }
 0x16b   : > { %v2079_v31 = vpop.f32.mrf.mxu1 }
 0x16c   : > { %v2372_v31 = vld [vmem:[#allocation11 + $0x48] sm:$0xff]  }
 0x17e   : > { %v2882_v40 = vpop.permute.xlu0 %858 }
 0x182   : > { %v2884_v43 = vpop.permute.xlu1 %863 }
 0x183   : > { %v838_v33 = vpop.f32.mrf.mxu0 }
 0x184   : > { %v845_v35 = vadd.f32 %v838_v33, %v708_v32  ;;  %v2373_v32 = vld [vmem:[#allocation11 + $0x18] sm:$0xff]   ;;  %v2374_v33 = vld [vmem:[#allocation11 + $0x40] sm:$0xff]  }
 0x185   : > { %v2098_v36 = vpop.f32.mrf.mxu0 }
 0x186   : > { %v854_v38 = vadd.f32 %v1874_v34, %v845_v35  ;;  %v2379_v35 = vld [vmem:[#allocation11 + $0x8] sm:$0xff]   ;;  %v2381_v36 = vld [vmem:[#allocation11] sm:$0xff]  }
 0x187   : > { %v841_v39 = vpop.f32.mrf.mxu0 }
 0x188   : > { %v846_v41 = vadd.f32 %v841_v39, %v711_v37  ;;  %v866_v45 = vmul.f32 %v2882_v40, %v854_v38 }
 0x189   : > { %v2099_v42 = vpop.f32.mrf.mxu0 }
 0x18a   : > { %v855_v44 = vadd.f32 %v1874_v34, %v846_v41  ;;  %v868_v47 = vmax.f32 %v866_v45, 0.0  ;;  %v2375_v34 = vld [vmem:[#allocation11 + $0x10] sm:$0xff]  }
 0x18c   : > { %v867_v46 = vmul.f32 %v2884_v43, %v855_v44 }
 0x18e   : > { %v869_v48 = vmax.f32 %v867_v46, 0.0 }
 0x190   : > { %v1950_v49 = vpack.c.bf16 %v869_v48, %v868_v47 }
 0x192   : > { %1957 = vst [vmem:[#allocation3 + $0x8] sm:$0xff] %v1950_v49   ;;  %v1906_v49 = vld [vmem:[%s2997_s5] ss:$0 sm:$0xff] }
 0x199   : > { %v881_v52 = vld [vmem:[#allocation3 + $0x8] sm:$0xf]  ;;  %v882_v53 = vld [vmem:[#allocation3 + $0xc] sm:$0xf] }
 0x19a   : > { %v1877_v54 = vcombine.low %v881_v52, %v882_v53  ;;  %v1886_v55 = vcombine.low %v880_v50, %v881_v52  ;;  %v1887_v56 = vcombine.low %v882_v53, %v882_v53  ;;  %v2360_v9 = vld [vmem:[#allocation3 + $0x8] sm:$0xff]  }
 0x19b   : > { %v1153_v13 = vshll.u32 %v2360_v9, 16  ;;  %v1151_v18 = vshrl.u32 %v2360_v9, 16 }
 0x19c   : > { %2117 = vmatmul.mubr.bf16.vlgmr.msra.gmra.mxu1 %v1877_v54  ;;  %v1016_v57 = vshrl.u32 %v1886_v55, 16  ;;  %v1019_v58 = vshll.u32 %v1886_v55, 16  ;;  %v1024_v59 = vshrl.u32 %v1887_v56, 16  ;;  %v1027_v60 = vshll.u32 %v1887_v56, 16 }
 0x19d   : > { %2141 = vmatpush3.bf16.msra.mxu1 %v2351_v51  ;;  %2156 = vmatprep.mubr.msk.bf16.mxu1 %vm2583_vm0, %v2582_v0  ;;  %v1155_v15 = vrot.slane %v1153_v13, 1 }
 0x19e   : > { %2142 = vmatprep.subr.bf16.mxu1 %v2582_v0  ;;  %v1018_v62 = vrot.slane %v1016_v57, 3  ;;  %v1021_v63 = vrot.slane %v1019_v58, 4  ;;  %v1026_v2 = vrot.slane %v1024_v59, 3  ;;  %v1029_v1 = vrot.slane %v1027_v60, 4 }
 0x19f   : > { %v1156_v19 = vor.u32 %v1155_v15, %v1151_v18 }
 0x1a0   : > { %v1022_v3 = vor.u32 %v1021_v63, %v1018_v62  ;;  %v1030_v4 = vor.u32 %v1029_v1, %v1026_v2  ;;  %v1277_v63 = vld [vmem:[#allocation2 + $0x4] sm:$0x8] }
 0x1a1   : > { %2143 = vmatpush3.bf16.msra.mxu1 %v2353_v61  ;;  %v1161_v21 = vsel %vm742_vm9, %v1156_v19, %v1160_v20  ;;  %v2380_v2 = vld [vmem:[#allocation11 + $0xb8] sm:$0xff]   ;;  %v2383_v19 = vld [vmem:[#allocation11 + $0xa8] sm:$0xff]  }
 0x1a2   : > { %v1031_v6 = vsel %vm606_vm8, %v1022_v3, %v1030_v4  ;;  %2144 = vmatprep.subr.bf16.mxu1 %v2582_v0 }
 0x1a3   : > { %2137 = vmatmul.mubr.bf16.vlgmr.msra.gmra.mxu0 %v1031_v6 }
 0x1a4   : > { %2176 = vmatprep.mubr.msk.bf16.mxu0 %vm2583_vm0, %v2582_v0  ;;  %2161 = vmatpush3.bf16.msra.mxu0 %v2362_v22  ;;  %v2385_v22 = vld [vmem:[#allocation11 + $0x98] sm:$0xff]  }
 0x1a5   : > { %2145 = vmatpush3.bf16.msra.mxu1 %v2354_v5  ;;  %2162 = vmatprep.subr.bf16.mxu0 %v2582_v0 }
 0x1a6   : > { %2146 = vmatprep.subr.bf16.mxu1 %v2582_v0 }
 0x1a8   : > { %2163 = vmatpush3.bf16.msra.mxu0 %v2363_v11 }
 0x1a9   : > { %2147 = vmatpush3.bf16.msra.mxu1 %v2355_v7  ;;  %2164 = vmatprep.subr.bf16.mxu0 %v2582_v0 }
 0x1aa   : > { %2148 = vmatprep.subr.bf16.mxu1 %v2582_v0 }
 0x1ac   : > { %2165 = vmatpush3.bf16.msra.mxu0 %v2364_v23  ;;  %v2386_v23 = vld [vmem:[#allocation11 + $0x90] sm:$0xff]  }
 0x1ad   : > { %2149 = vmatpush3.bf16.msra.mxu1 %v2356_v8  ;;  %2166 = vmatprep.subr.bf16.mxu0 %v2582_v0 }
 0x1ae   : > { %2150 = vmatprep.subr.bf16.mxu1 %v2582_v0 }
 0x1b0   : > { %2167 = vmatpush3.bf16.msra.mxu0 %v2366_v25 }
 0x1b1   : > { %2151 = vmatpush3.bf16.msra.mxu1 %v2357_v10  ;;  %2168 = vmatprep.subr.bf16.mxu0 %v2582_v0 }
 0x1b2   : > { %2152 = vmatprep.subr.bf16.mxu1 %v2582_v0 }
 0x1b4   : > { %2169 = vmatpush3.bf16.msra.mxu0 %v2368_v27 }
 0x1b5   : > { %2153 = vmatpush3.bf16.msra.mxu1 %v2358_v14  ;;  %2170 = vmatprep.subr.bf16.mxu0 %v2582_v0 }
 0x1b6   : > { %2154 = vmatprep.subr.bf16.mxu1 %v2582_v0 }
 0x1b8   : > { %2171 = vmatpush3.bf16.msra.mxu0 %v2370_v29  ;;  %v2388_v29 = vld [vmem:[#allocation11 + $0x80] sm:$0xff]  }
 0x1b9   : > { %2155 = vmatpush3.bf16.msra.mxu1 %v2359_v17  ;;  %2172 = vmatprep.subr.bf16.mxu0 %v2582_v0 }
 0x1ba   : > { %2180 = vmatprep.subr.bf16.mxu1 %v2582_v0 }
 0x1bc   : > { %2157 = vmatmul.mubr.bf16.vlgmr.msra.gmra.mxu1 %v1161_v21  ;;  %2173 = vmatpush3.bf16.msra.mxu0 %v2372_v31  ;;  %v2384_v21 = vld [vmem:[#allocation11 + $0xa0] sm:$0xff]  }
 0x1bd   : > { %2196 = vmatprep.mubr.msk.bf16.mxu1 %vm2583_vm0, %v2582_v0  ;;  %2181 = vmatpush3.bf16.msra.mxu1 %v2365_v24  ;;  %v2390_v24 = vld [vmem:[#allocation2 + $0x10] ss:$0 sps:$4 sm:$0x11]  }
 0x1be   : > { %2182 = vmatprep.subr.bf16.mxu1 %v2582_v0  ;;  %2174 = vmatprep.subr.bf16.mxu0 %v2582_v0 }
 0x1c0   : > { %2175 = vmatpush3.bf16.msra.mxu0 %v2374_v33 }
 0x1c1   : > { %2183 = vmatpush3.bf16.msra.mxu1 %v2367_v26  ;;  %2200 = vmatprep.subr.bf16.mxu0 %v2582_v0  ;;  %v2387_v26 = vld [vmem:[#allocation11 + $0x88] sm:$0xff]  }
 0x1c2   : > { %2184 = vmatprep.subr.bf16.mxu1 %v2582_v0 }
 0x1c5   : > { %2185 = vmatpush3.bf16.msra.mxu1 %v2369_v28  ;;  %v1555_v28 = vshll.u32 %v2390_v24, 16 }
 0x1c6   : > { %2186 = vmatprep.subr.bf16.mxu1 %v2582_v0 }
 0x1c9   : > { %2187 = vmatpush3.bf16.msra.mxu1 %v2371_v30 }
 0x1ca   : > { %2188 = vmatprep.subr.bf16.mxu1 %v2582_v0 }
 0x1cd   : > { %2189 = vmatpush3.bf16.msra.mxu1 %v2373_v32  ;;  %v1557_v32 = vrot.slane %v1555_v28, 1 }
 0x1ce   : > { %2190 = vmatprep.subr.bf16.mxu1 %v2582_v0 }
 0x1d1   : > { %2191 = vmatpush3.bf16.msra.mxu1 %v2375_v34 }
 0x1d2   : > { %2192 = vmatprep.subr.bf16.mxu1 %v2582_v0 }
 0x1d5   : > { %2193 = vmatpush3.bf16.msra.mxu1 %v2379_v35 }
 0x1d6   : > { %2194 = vmatprep.subr.bf16.mxu1 %v2582_v0 }
 0x1d9   : > { %2195 = vmatpush3.bf16.msra.mxu1 %v2381_v36 }
 0x25c   : > { %v1004_v37 = vpop.f32.mrf.mxu1 }
 0x25e   : > { %v2118_v38 = vpop.f32.mrf.mxu1 }
 0x260   : > { %v1007_v39 = vpop.f32.mrf.mxu1 }
 0x262   : > { %v2119_v41 = vpop.f32.mrf.mxu1 }
 0x263   : > { %v1115_v42 = vpop.f32.mrf.mxu0 }
 0x264   : > { %v1116_v47 = vadd.f32 %v1115_v42, %v1004_v37 }
 0x265   : > { %v2138_v44 = vpop.f32.mrf.mxu0 }
 0x267   : > { %v1118_v45 = vpop.f32.mrf.mxu0 }
 0x268   : > { %v1119_v52 = vadd.f32 %v1118_v45, %v1007_v39 }
 0x269   : > { %v2139_v46 = vpop.f32.mrf.mxu0 }
 0x27c   : > { %v1245_v48 = vpop.f32.mrf.mxu1 }
 0x27d   : > { %v1252_v50 = vadd.f32 %v1245_v48, %v1116_v47 }
 0x27e   : > { %v2158_v51 = vpop.f32.mrf.mxu1 }
 0x27f   : > { %v1261_v53 = vadd.f32 %v1906_v49, %v1252_v50 }
 0x280   : > { %v1248_v54 = vpop.f32.mrf.mxu1 }
 0x281   : > { %v1253_v55 = vadd.f32 %v1248_v54, %v1119_v52  ;;  %v1263_v57 = vmul.f32 %v1261_v53, %v2882_v40 }
 0x282   : > { %v2159_v56 = vpop.f32.mrf.mxu1 }
 0x283   : > { %v1262_v58 = vadd.f32 %v1906_v49, %v1253_v55  ;;  %v1265_v60 = vmax.f32 %v1263_v57, 0.0 }
 0x285   : > { %v1264_v59 = vmul.f32 %v1262_v58, %v2884_v43 }
 0x287   : > { %v1266_v61 = vmax.f32 %v1264_v59, 0.0 }
 0x289   : > { %v1955_v62 = vpack.c.bf16 %v1266_v61, %v1265_v60 }
 0x28b   : > { %1958 = vst [vmem:[#allocation2 + $0x8] sm:$0xff] %v1955_v62  }
 0x292   : > { %v1278_v1 = vld [vmem:[#allocation2 + $0x8] sm:$0xf]  ;;  %v1279_v3 = vld [vmem:[#allocation2 + $0xc] sm:$0xf] }
 0x293   : > { %v1909_v4 = vcombine.low %v1278_v1, %v1279_v3  ;;  %v1918_v5 = vcombine.low %v1277_v63, %v1278_v1  ;;  %v1919_v6 = vcombine.low %v1279_v3, %v1279_v3  ;;  %v2389_v11 = vld [vmem:[#allocation2 + $0x8] sm:$0xff]  }
 0x294   : > { %v1550_v25 = vshll.u32 %v2389_v11, 16  ;;  %v1548_v30 = vshrl.u32 %v2389_v11, 16 }
 0x295   : > { %2177 = vmatmul.mubr.bf16.vlgmr.msra.gmra.mxu0 %v1909_v4  ;;  %v1413_v7 = vshrl.u32 %v1918_v5, 16  ;;  %v1416_v8 = vshll.u32 %v1918_v5, 16  ;;  %v1421_v9 = vshrl.u32 %v1919_v6, 16  ;;  %v1424_v10 = vshll.u32 %v1919_v6, 16 }
 0x296   : > { %2201 = vmatpush3.bf16.msra.mxu0 %v2380_v2  ;;  %2216 = vmatprep.mubr.msk.bf16.mxu0 %vm2583_vm0, %v2582_v0  ;;  %v1552_v27 = vrot.slane %v1550_v25, 1 }
 0x297   : > { %2202 = vmatprep.subr.bf16.mxu0 %v2582_v0  ;;  %v1415_v13 = vrot.slane %v1413_v7, 3  ;;  %v1418_v14 = vrot.slane %v1416_v8, 4  ;;  %v1423_v15 = vrot.slane %v1421_v9, 3  ;;  %v1426_v16 = vrot.slane %v1424_v10, 4 }
 0x298   : > { %v1553_v31 = vor.u32 %v1552_v27, %v1548_v30 }
 0x299   : > { %v1419_v17 = vor.u32 %v1418_v14, %v1415_v13  ;;  %v1427_v18 = vor.u32 %v1426_v16, %v1423_v15 }
 0x29a   : > { %2203 = vmatpush3.bf16.msra.mxu0 %v2382_v12  ;;  %v1558_v33 = vsel %vm742_vm9, %v1553_v31, %v1557_v32 }
 0x29b   : > { %v1428_v20 = vsel %vm606_vm8, %v1419_v17, %v1427_v18  ;;  %2204 = vmatprep.subr.bf16.mxu0 %v2582_v0 }
 0x29c   : > { %2197 = vmatmul.mubr.bf16.vlgmr.msra.gmra.mxu1 %v1428_v20 }
 0x29e   : > { %2205 = vmatpush3.bf16.msra.mxu0 %v2383_v19 }
 0x29f   : > { %2206 = vmatprep.subr.bf16.mxu0 %v2582_v0 }
 0x2a2   : > { %2207 = vmatpush3.bf16.msra.mxu0 %v2384_v21 }
 0x2a3   : > { %2208 = vmatprep.subr.bf16.mxu0 %v2582_v0 }
 0x2a6   : > { %2209 = vmatpush3.bf16.msra.mxu0 %v2385_v22 }
 0x2a7   : > { %2210 = vmatprep.subr.bf16.mxu0 %v2582_v0 }
 0x2aa   : > { %2211 = vmatpush3.bf16.msra.mxu0 %v2386_v23 }
 0x2ab   : > { %2212 = vmatprep.subr.bf16.mxu0 %v2582_v0 }
 0x2ae   : > { %2213 = vmatpush3.bf16.msra.mxu0 %v2387_v26 }
 0x2af   : > { %2214 = vmatprep.subr.bf16.mxu0 %v2582_v0  ;;  %v1938_v0 = vld [vmem:[%s2999_s7] ss:$0 sm:$0xff] }
 0x2b2   : > { %2215 = vmatpush3.bf16.msra.mxu0 %v2388_v29 }
 0x2b5   : > { %2217 = vmatmul.mubr.bf16.vlgmr.msra.gmra.mxu0 %v1558_v33 }
 0x355   : > { %v1401_v34 = vpop.f32.mrf.mxu0 }
 0x357   : > { %v2178_v35 = vpop.f32.mrf.mxu0 }
 0x359   : > { %v1404_v36 = vpop.f32.mrf.mxu0 }
 0x35b   : > { %v2179_v37 = vpop.f32.mrf.mxu0 }
 0x35c   : > { %v1512_v38 = vpop.f32.mrf.mxu1 }
 0x35d   : > { %v1513_v44 = vadd.f32 %v1512_v38, %v1401_v34 }
 0x35e   : > { %v2198_v39 = vpop.f32.mrf.mxu1 }
 0x360   : > { %v1515_v41 = vpop.f32.mrf.mxu1 }
 0x361   : > { %v1516_v48 = vadd.f32 %v1515_v41, %v1404_v36 }
 0x362   : > { %v2199_v42 = vpop.f32.mrf.mxu1 }
 0x375   : > { %v1642_v45 = vpop.f32.mrf.mxu0 }
 0x376   : > { %v1649_v46 = vadd.f32 %v1642_v45, %v1513_v44 }
 0x377   : > { %v2218_v47 = vpop.f32.mrf.mxu0 }
 0x378   : > { %v1658_v49 = vadd.f32 %v1938_v0, %v1649_v46 }
 0x379   : > { %v1645_v50 = vpop.f32.mrf.mxu0 }
 0x37a   : > { %v1650_v51 = vadd.f32 %v1645_v50, %v1516_v48  ;;  %v1660_v52 = vmul.f32 %v1658_v49, %v2882_v40 }
 0x37b   : > { %v2219_v53 = vpop.f32.mrf.mxu0 }
 0x37c   : > { %v1659_v54 = vadd.f32 %v1938_v0, %v1650_v51  ;;  %1662 = vxpose.xlu1.b32.start [1/2] (short) %v1660_v52, 128 }
 0x37e   : > { %v1661_v55 = vmul.f32 %v1659_v54, %v2884_v43 }
 0x380   : > { %1663 = vxpose.xlu1.b32.end [2/2] (short) %v1661_v55, 128 }
 0x3f8   : > { %v1678_v40 = vpop.trf.xlu1 }
 0x3f9   : > { %1695 = vst.msk [vmem:[%s2945_s19] sm:$0xff] %vm1694_vm10, %v1678_v40 }
 0x3fc   : > { %v1679_v43 = vpop.trf.xlu1 }
 0x3fd   : > { %1696 = vst.msk [vmem:[%s2945_s19 + $0x8] sm:$0xff] %vm1694_vm10, %v1679_v43 }
 0x400   : > { %v1680_v56 = vpop.trf.xlu1 }
 0x401   : > { %1697 = vst.msk [vmem:[%s2945_s19 + $0x10] sm:$0xff] %vm1694_vm10, %v1680_v56 }
 0x404   : > { %v1681_v57 = vpop.trf.xlu1 }
 0x405   : > { %1698 = vst.msk [vmem:[%s2945_s19 + $0x18] sm:$0xff] %vm1694_vm10, %v1681_v57 }
 0x408   : > { %v1682_v58 = vpop.trf.xlu1 }
 0x409   : > { %1699 = vst.msk [vmem:[%s2945_s19 + $0x20] sm:$0xff] %vm1694_vm10, %v1682_v58 }
 0x40c   : > { %v1683_v59 = vpop.trf.xlu1 }
 0x40d   : > { %1700 = vst.msk [vmem:[%s2945_s19 + $0x28] sm:$0xff] %vm1694_vm10, %v1683_v59 }
 0x410   : > { %v1684_v60 = vpop.trf.xlu1 }
 0x411   : > { %1701 = vst.msk [vmem:[%s2945_s19 + $0x30] sm:$0xff] %vm1694_vm10, %v1684_v60 }
 0x414   : > { %v1685_v61 = vpop.trf.xlu1 }
 0x415   : > { %1702 = vst.msk [vmem:[%s2945_s19 + $0x38] sm:$0xff] %vm1694_vm10, %v1685_v61 }
 0x418   : > { %v1686_v62 = vpop.trf.xlu1 }
 0x419   : > { %1703 = vst.msk [vmem:[%s2945_s19 + $0x40] sm:$0xff] %vm1694_vm10, %v1686_v62 }
 0x41c   : > { %v1687_v63 = vpop.trf.xlu1 }
 0x41d   : > { %1704 = vst.msk [vmem:[%s2945_s19 + $0x48] sm:$0xff] %vm1694_vm10, %v1687_v63 }
 0x420   : > { %v1688_v2 = vpop.trf.xlu1 }
 0x421   : > { %1705 = vst.msk [vmem:[%s2945_s19 + $0x50] sm:$0xff] %vm1694_vm10, %v1688_v2 }
 0x424   : > { %v1689_v1 = vpop.trf.xlu1 }
 0x425   : > { %1706 = vst.msk [vmem:[%s2945_s19 + $0x58] sm:$0xff] %vm1694_vm10, %v1689_v1 }
 0x428   : > { %v1690_v3 = vpop.trf.xlu1 }
 0x429   : > { %1707 = vst.msk [vmem:[%s2945_s19 + $0x60] sm:$0xff] %vm1694_vm10, %v1690_v3 }
 0x42c   : > { %v1691_v4 = vpop.trf.xlu1 }
 0x42d   : > { %1708 = vst.msk [vmem:[%s2945_s19 + $0x68] sm:$0xff] %vm1694_vm10, %v1691_v4 }
 0x430   : > { %v1692_v5 = vpop.trf.xlu1 }
 0x431   : > { %1709 = vst.msk [vmem:[%s2945_s19 + $0x70] sm:$0xff] %vm1694_vm10, %v1692_v5 }
 0x434   : > { %v1693_v6 = vpop.trf.xlu1 }
 0x435   : > { %1710 = vst.msk [vmem:[%s2945_s19 + $0x78] sm:$0xff] %vm1694_vm10, %v1693_v6 }
 0x436 PF: > { %p22_p10 = scmp.ge.s32.totalorder %s2700_s15, 4   ;;  %s3026_s27 = smov %s2563_s28 }
 0x437   : > { %s3027_s28 = smov %s2567_s29  ;;  %s3028_s29 = smov %s2710_s17 }
 0x438   : > { %s3029_s30 = smov %s2700_s15  ;;  %24 = sbr.rel (!%p22_p10) target bundleno = 11 (0xb), region = 123 }
 0x43d   :  { %1732 = vsyncpa [#allocation5], 1 }
 0x43e   :  { %1734 = vsyncpa [#allocation5 + $0x1], 1 }
 0x43f   :  { %1735 = vsyncpa [#allocation7], 1 }
 0x440   :  { %1737 = vsyncpa [#allocation7 + $0x1], 1 }
 0x441   :  { %1738 = vsyncpa [#allocation10], 1 }

</bundles_post_ra>
